<compile_context>
chip_gen: v6e
topology: v6e:2x2x1
jax: 0.10.0
libtpu: 0.0.40
codegen_flags: <defaults>
</compile_context>

<pallas_src>
import functools

import jax
import jax.numpy as jnp
from jax.experimental import pallas as pl
from jax.experimental.pallas import tpu as pltpu


def _round_up(x: int, m: int) -> int:
    return ((x + m - 1) // m) * m


_VMEM_CAP = None


def _vmem_cap_bytes() -> int:
    """~85% of physical VMEM (leaves headroom for Mosaic scratch); 48 MiB fallback."""
    global _VMEM_CAP
    if _VMEM_CAP is None:
        try:
            _VMEM_CAP = int(pltpu.get_tpu_info().vmem_capacity_bytes * 0.85)
        except Exception:
            _VMEM_CAP = 48 << 20
    return _VMEM_CAP


def _residual_linear_kernel(x_ref, w_ref, b_ref, o_ref, *, tn, mm_dtype):
    # module_factor already folded into w_ref / b_ref:
    #   out = (x @ (W*f) + b*f) + x
    # x_ref is the full-K (tm, Hp) f32 block; the residual tile is a lane-aligned slice of it.
    col = pl.multiple_of(pl.program_id(0) * tn, 128)
    x_full = x_ref[...]                                           # (tm, Hp) f32
    y = jnp.dot(x_full.astype(mm_dtype), w_ref[...],
                preferred_element_type=jnp.float32)               # (tm, tn) f32 accumulate
    res = x_ref[:, pl.ds(col, tn)]                                # residual slice, f32
    o_ref[...] = (y + b_ref[...] + res).astype(o_ref.dtype)


def fold_linear_params(weight, bias, module_factor=1.0, use_bf16=True):
    """One-time parameter transform: scale by module_factor, pad hidden to a multiple of 128,
    cast matmul weight to bf16 (optional). Do this at module init, not per call."""
    H = weight.shape[0]
    Hp = _round_up(H, 128)
    w = weight.astype(jnp.float32) * module_factor
    b = bias.astype(jnp.float32) * module_factor
    if Hp != H:
        w = jnp.pad(w, ((0, Hp - H), (0, Hp - H)))
        b = jnp.pad(b, ((0, Hp - H),))
    mm_dtype = jnp.bfloat16 if use_bf16 else jnp.float32
    return w.astype(mm_dtype), b.reshape(1, Hp)


@functools.partial(jax.jit, static_argnames=("tile_m", "tile_n"))
def residual_connection_forward(x, w_folded, b_folded, *, tile_m=256, tile_n=256):
    """
    x:        (B, S, H) float32
    w_folded: (Hp, Hp)  bf16/f32, pre-scaled by module_factor, stored (in, out)
    b_folded: (1, Hp)   float32, pre-scaled by module_factor
    returns   (B, S, H): Linear(x) * module_factor + x
    """
    B, S, H = x.shape
    M = B * S
    Hp = w_folded.shape[0]
    mm_dtype = w_folded.dtype
    esize = jnp.dtype(mm_dtype).itemsize

    # Lane-dense, exactly-dividing tile sizes (all static Python under jit).
    tn = _round_up(min(tile_n, Hp), 128)
    while Hp % tn:
        tn -= 128
    tm = _round_up(min(tile_m, _round_up(M, 8)), 8)

    # Static VMEM-fit adjustment (double-buffered x full-K block + weight tile + bias + out).
    def _need(tm_, tn_):
        return (2 * tm_ * Hp * 4          # x (f32, full K)
                + 2 * Hp * tn_ * esize    # weight tile
                + 2 * 8 * tn_ * 4         # bias tile (sublane-padded)
                + 2 * tm_ * tn_ * 4)      # output tile
    cap = _vmem_cap_bytes()
    while _need(tm, tn) > cap and tm > 8:
        tm = max(8, _round_up(tm // 2, 8))
    # TODO(synk): for very large Hp (>~4K in f32) add a K grid axis + f32 accumulator scratch
    # instead of full-K blocks; not needed for typical Squeezeformer hidden sizes.

    Mp = _round_up(M, tm)
    n_i = Mp // tm            # M tiles (inner)
    n_j = Hp // tn            # output-hidden tiles (outer; weight/bias change only here)

    x2 = x.reshape(M, H).astype(jnp.float32)
    if Mp != M or Hp != H:
        x2 = jnp.pad(x2, ((0, Mp - M), (0, Hp - H)))

    vmem_need = _need(tm, tn)
    vmem_limit = min(max(int(vmem_need * 1.5) + (2 << 20), 8 << 20), cap)

    cost = pl.CostEstimate(
        flops=2 * Mp * Hp * Hp + 2 * Mp * Hp,
        transcendentals=0,
        bytes_accessed=(n_j * Mp * Hp * 4      # x re-read once per output-column tile
                        + Hp * Hp * esize      # weight read once
                        + Hp * 4               # bias read once
                        + Mp * Hp * 4),        # output written once
    )

    kernel = functools.partial(_residual_linear_kernel, tn=tn, mm_dtype=mm_dtype)

    out = pl.pallas_call(
        kernel,
        out_shape=jax.ShapeDtypeStruct((Mp, Hp), x.dtype),
        grid_spec=pltpu.PrefetchScalarGridSpec(
            num_scalar_prefetch=0,
            # N axis outer so the weight/bias blocks change rarely (Pallas skips the re-DMA
            # across the inner i loop because their block index is independent of i).
            grid=(n_j, n_i),
            in_specs=[
                pl.BlockSpec((tm, Hp), lambda j, i: (i, 0)),   # x: matmul operand + residual
                pl.BlockSpec((Hp, tn), lambda j, i: (0, j)),   # weight tile
                pl.BlockSpec((1, tn), lambda j, i: (0, j)),    # bias tile
            ],
            out_specs=pl.BlockSpec((tm, tn), lambda j, i: (i, j)),
        ),
        compiler_params=pltpu.CompilerParams(
            dimension_semantics=("parallel", "parallel"),
            vmem_limit_bytes=vmem_limit,
        ),
        cost_estimate=cost,
    )(x2, w_folded, b_folded)

    return out[:M, :H].reshape(B, S, H)


if __name__ == "__main__":
    # Small deterministic setup: batch=2, seq=8, hidden=32
    B, S, H = 2, 8, 32
    module_factor = 0.5

    key = jax.random.PRNGKey(0)
    kx, kw, kb = jax.random.split(key, 3)

    x = jax.random.normal(kx, (B, S, H), dtype=jnp.float32)
    # Linear(H, H) parameters stored as (in, out) so y = x @ W + b
    weight = jax.random.normal(kw, (H, H), dtype=jnp.float32) * (1.0 / jnp.sqrt(H))
    bias = jax.random.normal(kb, (H,), dtype=jnp.float32) * 0.1

    # Pure-JAX reference
    ref = (jnp.einsum("bsh,hk->bsk", x, weight) + bias) * module_factor + x

    # f32 matmul path (tight tolerance)
    w32, b32 = fold_linear_params(weight, bias, module_factor, use_bf16=False)
    out32 = jax.block_until_ready(residual_connection_forward(x, w32, b32))
    assert jnp.allclose(out32, ref, atol=1e-5, rtol=1e-5), "f32 path mismatch vs reference"

    # bf16-operand / f32-accumulate path (default; looser tolerance)
    wbf, bbf = fold_linear_params(weight, bias, module_factor, use_bf16=True)
    outbf = jax.block_until_ready(residual_connection_forward(x, wbf, bbf))
    assert jnp.allclose(outbf, ref, atol=3e-2, rtol=3e-2), "bf16 path mismatch vs reference"

    print("KERNEL_OK")
</pallas_src>

<mosaic_0001>
module attributes {stable_mosaic.version = 11 : i64} {
  func.func @_residual_linear_kernel(%arg0: i32, %arg1: i32, %arg2: memref<16x128xf32, #tpu.memory_space<vmem>>, %arg3: memref<128x128xf32, #tpu.memory_space<vmem>>, %arg4: memref<1x128xf32, #tpu.memory_space<vmem>>, %arg5: memref<16x128xf32, #tpu.memory_space<vmem>>) attributes {dimension_semantics = [#tpu.dimension_semantics<parallel>, #tpu.dimension_semantics<parallel>], iteration_bounds = array<i64: 1, 1>, scalar_prefetch = 0 : i64, scratch_operands = 0 : i64, tpu.core_type = #tpu.core_type<tc>, window_params = [{transform_indices = @transform_0, window_bounds = array<i64: 16, 128>}, {transform_indices = @transform_1, window_bounds = array<i64: 128, 128>}, {transform_indices = @transform_2, window_bounds = array<i64: 1, 128>}, {transform_indices = @transform_3, window_bounds = array<i64: 16, 128>}]} {
    %c128_i32 = arith.constant 128 : i32
    %0 = arith.muli %arg0, %c128_i32 : i32
    %1 = tpu.assume_multiple %0, 128 : i32
    %c0 = arith.constant 0 : index
    %c0_0 = arith.constant 0 : index
    %2 = vector.load %arg2[%c0, %c0_0] : memref<16x128xf32, #tpu.memory_space<vmem>>, vector<16x128xf32>
    %c0_1 = arith.constant 0 : index
    %c0_2 = arith.constant 0 : index
    %3 = vector.load %arg3[%c0_1, %c0_2] : memref<128x128xf32, #tpu.memory_space<vmem>>, vector<128x128xf32>
    %cst = arith.constant dense<0.000000e+00> : vector<16x128xf32>
    %4 = tpu.matmul %2, %3, %cst {dimension_numbers = #tpu.dot_dimension_numbers<[1], [0], [0], [1], [0, 0, 1, 1], [], []>} : vector<16x128xf32>, vector<128x128xf32>, vector<16x128xf32> -> vector<16x128xf32>
    %c0_3 = arith.constant 0 : index
    %5 = arith.index_cast %1 : i32 to index
    %6 = vector.load %arg2[%c0_3, %5] : memref<16x128xf32, #tpu.memory_space<vmem>>, vector<16x128xf32>
    %c0_4 = arith.constant 0 : index
    %c0_5 = arith.constant 0 : index
    %7 = vector.load %arg4[%c0_4, %c0_5] : memref<1x128xf32, #tpu.memory_space<vmem>>, vector<1x128xf32>
    %8 = vector.broadcast %7 : vector<1x128xf32> to vector<16x128xf32>
    %9 = arith.addf %4, %8 : vector<16x128xf32>
    %10 = arith.addf %9, %6 : vector<16x128xf32>
    %c0_6 = arith.constant 0 : index
    %c0_7 = arith.constant 0 : index
    %11 = vector.load %arg5[%c0_6, %c0_7] : memref<16x128xf32, #tpu.memory_space<vmem>>, vector<16x128xf32>
    tpu.vector_store %arg5[%c0_6, %c0_7], %10 {strides = array<i32>} : memref<16x128xf32, #tpu.memory_space<vmem>>, vector<16x128xf32>,
    return
  }
  func.func @transform_0(%arg0: i32, %arg1: i32) -> (i32, i32) {
    %c0_i32 = arith.constant 0 : i32
    %c0_i32_0 = arith.constant 0 : i32
    return %arg1, %c0_i32 : i32, i32
  }
  func.func @transform_1(%arg0: i32, %arg1: i32) -> (i32, i32) {
    %c0_i32 = arith.constant 0 : i32
    %c0_i32_0 = arith.constant 0 : i32
    return %c0_i32, %arg0 : i32, i32
  }
  func.func @transform_2(%arg0: i32, %arg1: i32) -> (i32, i32) {
    %c0_i32 = arith.constant 0 : i32
    %c0_i32_0 = arith.constant 0 : i32
    return %c0_i32, %arg0 : i32, i32
  }
  func.func @transform_3(%arg0: i32, %arg1: i32) -> (i32, i32) {
    %c0_i32 = arith.constant 0 : i32
    return %arg1, %arg0 : i32, i32
  }
}

</mosaic_0001>

<bundles_post_ra>
// kernel: residual_connection_forward.1
= control target key start
LH: loop header
LB: loop body
LE: loop exit
PB: predicated region body
PF: predicated region fallthrough
CT: control target
= control target key end

     0   :  { %8 = vsyncpa [#allocation3], 0  ;;  %s223_s12 = smov [#allocation2]   ;;  %s264_s0 = inlined_call_operand.vmem [shape: f32[16,128], index: 0, kind: input, shape index: {}]   ;;  %s265_s1 = inlined_call_operand.hbm [shape: f32[128,128], index: 1, kind: input, shape index: {}]   ;;  %s266_s2 = inlined_call_operand.vmem [shape: f32[1,128], index: 2, kind: input, shape index: {}]   ;;  %s267_s3 = inlined_call_operand.vmem [shape: f32[16,128], index: 3, kind: output, shape index: {}]  }
   0x1   :  { %s16_s13 = sshll.u32 %s223_s12, 4  ;;  %s17_s13 = int_to_ptr.vmem [resolvable:$true] %s16_s13 }
   0x2   :  { %s209_s14 = scalar_lea.vmem %s17_s13, 2048  ;;  %p214_p1 = scmp.lt.s32.totalorder %s17_s13, %s17_s13 }
   0x3   :  { %p210_p0 = scmp.ne.s32.totalorder %s17_s13, %s209_s14  ;;  %p215_p2 = scmp.lt.s32.totalorder %s209_s14, %s209_s14 }
   0x5   :  { %p216_p3 = por %p215_p2, %p214_p1 }
   0x7   :  { %p217_p4 = pnand %p216_p3, %p210_p0 }
   0x9   :  { %220 = shalt.err (!%p217_p4)
}
   0xa   :  { %s224_s15 = smov 128   ;;  %s225_s16 = smov 8  }
   0xb   :  { %22 = dma.hbm_to_vmem [thread:$0]  %s265_s1, 2048, %s17_s13, [#allocation3], %s224_s15, %s224_s15, %s225_s16  }
   0xc   :  { %221 = dma.done.wait [#allocation3], 2048  }
   0xd   :  { %222 = vsyncadd [#allocation3], 4294965248  ;;  %v46_v0 = vld [vmem:[#allocation2 + $0x78] sm:$0xff]  ;;  %v45_v1 = vld [vmem:[#allocation2 + $0x70] sm:$0xff] }
   0xe   :  { %163 = vmatprep.subr.mxu0 %v46_v0  ;;  %v44_v2 = vld [vmem:[#allocation2 + $0x68] sm:$0xff]  ;;  %v43_v3 = vld [vmem:[#allocation2 + $0x60] sm:$0xff]  ;;  %v42_v5 = vld [vmem:[#allocation2 + $0x58] sm:$0xff] }
   0xf   :  { %164 = vmatpush3.msra.mxu0 %v46_v0  ;;  %v29_v4 = vld [vmem:[%s264_s0] sm:$0xff]  ;;  %v41_v6 = vld [vmem:[#allocation2 + $0x50] sm:$0xff]  ;;  %v40_v7 = vld [vmem:[#allocation2 + $0x48] sm:$0xff] }
  0x10   :  { %165 = vmatprep.subr.mxu0 %v45_v1  ;;  %195 = vmatprep.mubr.f32.mxu0 %v29_v4  ;;  %v39_v8 = vld [vmem:[#allocation2 + $0x40] sm:$0xff]  ;;  %v38_v9 = vld [vmem:[#allocation2 + $0x38] sm:$0xff]  ;;  %v37_v10 = vld [vmem:[#allocation2 + $0x30] sm:$0xff] }
  0x11   :  { %166 = vmatpush3.msra.mxu0 %v45_v1  ;;  %v36_v11 = vld [vmem:[#allocation2 + $0x28] sm:$0xff]  ;;  %v35_v12 = vld [vmem:[#allocation2 + $0x20] sm:$0xff]  ;;  %v34_v13 = vld [vmem:[#allocation2 + $0x18] sm:$0xff] }
  0x12   :  { %167 = vmatprep.subr.mxu0 %v44_v2  ;;  %v33_v14 = vld [vmem:[#allocation2 + $0x10] sm:$0xff]  ;;  %v32_v15 = vld [vmem:[#allocation2 + $0x8] sm:$0xff]  ;;  %v31_v16 = vld [vmem:[#allocation2] sm:$0xff] }
  0x13   :  { %168 = vmatpush3.msra.mxu0 %v44_v2  ;;  %v30_v17 = vld [vmem:[%s264_s0 + $0x8] sm:$0xff]  ;;  %v144_v18 = vld [vmem:[%s266_s2] ss:$0 sm:$0xff] }
  0x14   :  { %169 = vmatprep.subr.mxu0 %v43_v3 }
  0x15   :  { %170 = vmatpush3.msra.mxu0 %v43_v3 }
  0x16   :  { %171 = vmatprep.subr.mxu0 %v42_v5 }
  0x17   :  { %172 = vmatpush3.msra.mxu0 %v42_v5 }
  0x18   :  { %173 = vmatprep.subr.mxu0 %v41_v6 }
  0x19   :  { %174 = vmatpush3.msra.mxu0 %v41_v6 }
  0x1a   :  { %175 = vmatprep.subr.mxu0 %v40_v7 }
  0x1b   :  { %176 = vmatpush3.msra.mxu0 %v40_v7 }
  0x1c   :  { %177 = vmatprep.subr.mxu0 %v39_v8 }
  0x1d   :  { %178 = vmatpush3.msra.mxu0 %v39_v8 }
  0x1e   :  { %179 = vmatprep.subr.mxu0 %v38_v9 }
  0x1f   :  { %180 = vmatpush3.msra.mxu0 %v38_v9 }
  0x20   :  { %181 = vmatprep.subr.mxu0 %v37_v10 }
  0x21   :  { %182 = vmatpush3.msra.mxu0 %v37_v10 }
  0x22   :  { %183 = vmatprep.subr.mxu0 %v36_v11 }
  0x23   :  { %184 = vmatpush3.msra.mxu0 %v36_v11 }
  0x24   :  { %185 = vmatprep.subr.mxu0 %v35_v12 }
  0x25   :  { %186 = vmatpush3.msra.mxu0 %v35_v12 }
  0x26   :  { %187 = vmatprep.subr.mxu0 %v34_v13 }
  0x27   :  { %188 = vmatpush3.msra.mxu0 %v34_v13 }
  0x28   :  { %189 = vmatprep.subr.mxu0 %v33_v14 }
  0x29   :  { %190 = vmatpush3.msra.mxu0 %v33_v14 }
  0x2a   :  { %191 = vmatprep.subr.mxu0 %v32_v15 }
  0x2b   :  { %192 = vmatpush3.msra.mxu0 %v32_v15 }
  0x2c   :  { %193 = vmatprep.subr.mxu0 %v31_v16 }
  0x2d   :  { %194 = vmatpush3.msra.mxu0 %v31_v16 }
  0x2e   :  { %196 = vmatmul.mubr.f32.vlgmr.msra.gmra.mxu0 %v30_v17 }
  0xee   :  { %v197_v19 = vpop.f32.mrf.mxu0 }
  0xef   :  { %v131_v20 = vadd.f32 %v197_v19, %v144_v18 }
  0xf0   :  { %v125_v21 = vpop.f32.mrf.mxu0 }
  0xf1   :  { %v135_v22 = vadd.f32 %v131_v20, %v30_v17  ;;  %v126_v23 = vadd.f32 %v144_v18, %v125_v21 }
  0xf3   :  { %137 = vst [vmem:[%s267_s3 + $0x8] sm:$0xff] %v135_v22  ;;  %v134_v24 = vadd.f32 %v126_v23, %v29_v4 }
  0xf5   :  { %136 = vst [vmem:[%s267_s3] sm:$0xff] %v134_v24 }
  0xf6   :  { %142 = vsyncpa [#allocation3], 1 }

</bundles_post_ra>
